<compile_context>
chip_gen: v6e
topology: v6e:2x2x1
jax: 0.10.0
libtpu: 0.0.40
codegen_flags: <defaults>
</compile_context>

<pallas_src>
import functools
import warnings

import jax
import jax.numpy as jnp
import numpy as np
from jax.experimental import pallas as pl
from jax.experimental.pallas import tpu as pltpu

# Donation is requested so the pallas output can reuse the input's HBM buffer;
# if XLA ever declines, it is a benign perf-only message we don't want on stderr.
warnings.filterwarnings("ignore", message="Some donated buffers were not usable")

_LANE = 128


def identity_kernel(x_ref, o_ref):
    # Hot path: forward() has no compute, just a full-tile VMEM pass-through.
    o_ref[...] = x_ref[...]


def _lane_dense_view(n: int):
    """Pick a 2-D view (rows, width) with width a large multiple of 128."""
    for cand in (2048, 1024, 512, 256, 128):
        if n % cand == 0:
            return n // cand, cand
    return None


def _block_rows(rows: int, width: int, itemsize: int,
                target_bytes: int = 2 * 1024 * 1024) -> int:
    """~2 MiB blocks: double-buffered in+out (~8 MiB) stays well under the
    32 MiB default scoped VMEM and v7x's 64 MiB physical VMEM."""
    per_row = width * itemsize
    br = max(1, target_bytes // per_row)
    if br >= rows:
        return rows                            # single block == full array dims
    return min(rows, max(8, (br // 8) * 8))    # sublane-aligned (multiple of 8)


@functools.partial(jax.jit, donate_argnums=(0,))
def lora_model_forward(x: jax.Array) -> jax.Array:
    """Pallas implementation of LoraModel.forward (identity).

    The input is flattened to a lane-dense 2-D view (last dim a large multiple
    of 128), streamed through VMEM in multi-MiB sublane-aligned blocks on a
    parallel grid, and written back into the donated input buffer via
    input_output_aliases, so no second HBM copy is allocated.
    """
    # TODO(synk): the wrapped HuggingFace ViT (self.model / self.processor) and
    # LoRA adapters are never invoked in LoraModel.forward(); only the identity
    # pass-through is required by the reference semantics.
    orig_shape = x.shape
    n = x.size
    view = _lane_dense_view(n)
    if view is None:
        # Identity needs no kernel at all; fall back for lane-unfriendly sizes.
        return x

    rows, width = view
    x2 = x.reshape(rows, width)
    br = _block_rows(rows, width, x.dtype.itemsize)
    grid = (pl.cdiv(rows, br),)

    y2 = pl.pallas_call(
        identity_kernel,
        out_shape=jax.ShapeDtypeStruct((rows, width), x2.dtype),
        grid=grid,
        in_specs=[pl.BlockSpec((br, width), lambda i: (i, 0))],
        out_specs=pl.BlockSpec((br, width), lambda i: (i, 0)),
        # Output reuses the (donated) input's HBM buffer: one read + one write
        # stream per block, no second HBM allocation.
        input_output_aliases={0: 0},
        compiler_params=pltpu.CompilerParams(
            # Parallel grid axis lets v7x's two TensorCores split the stream;
            # measured as a no-op on single-TC v5e/v6e, so it costs nothing.
            dimension_semantics=("parallel",),
        ),
    )(x2)
    return y2.reshape(orig_shape)


if __name__ == "__main__":
    # LoraModel wraps a ViT image classifier, so inputs are NCHW images.
    key = jax.random.PRNGKey(0)
    x = jax.random.normal(key, (2, 4, 16, 16), dtype=jnp.float32)
    x_np = np.asarray(x)  # snapshot before the input buffer is donated

    y = lora_model_forward(x)
    y = jax.block_until_ready(y)

    assert y.shape == x_np.shape and y.dtype == x_np.dtype
    assert bool(jnp.array_equal(y, jnp.asarray(x_np)))
    print("KERNEL_OK")
</pallas_src>

<mosaic_0001>
module attributes {stable_mosaic.version = 11 : i64} {
  func.func @identity_kernel(%arg0: i32, %arg1: memref<1x2048xf32, #tpu.memory_space<vmem>>, %arg2: memref<1x2048xf32, #tpu.memory_space<vmem>>) attributes {dimension_semantics = [#tpu.dimension_semantics<parallel>], iteration_bounds = array<i64: 1>, scalar_prefetch = 0 : i64, scratch_operands = 0 : i64, tpu.core_type = #tpu.core_type<tc>, window_params = [{transform_indices = @transform_0, window_bounds = array<i64: 1, 2048>}, {transform_indices = @transform_1, window_bounds = array<i64: 1, 2048>}]} {
    %c0 = arith.constant 0 : index
    %c0_0 = arith.constant 0 : index
    %0 = vector.load %arg1[%c0, %c0_0] : memref<1x2048xf32, #tpu.memory_space<vmem>>, vector<1x2048xf32>
    %c0_1 = arith.constant 0 : index
    %c0_2 = arith.constant 0 : index
    %1 = vector.load %arg2[%c0_1, %c0_2] : memref<1x2048xf32, #tpu.memory_space<vmem>>, vector<1x2048xf32>
    tpu.vector_store %arg2[%c0_1, %c0_2], %0 {strides = array<i32>} : memref<1x2048xf32, #tpu.memory_space<vmem>>, vector<1x2048xf32>,
    return
  }
  func.func @transform_0(%arg0: i32) -> (i32, i32) {
    %c0_i32 = arith.constant 0 : i32
    %c0_i32_0 = arith.constant 0 : i32
    return %arg0, %c0_i32 : i32, i32
  }
  func.func @transform_1(%arg0: i32) -> (i32, i32) {
    %c0_i32 = arith.constant 0 : i32
    %c0_i32_0 = arith.constant 0 : i32
    return %arg0, %c0_i32 : i32, i32
  }
}

</mosaic_0001>

<bundles_post_ra>
// kernel: lora_model_forward.1
= control target key start
LH: loop header
LB: loop body
LE: loop exit
PB: predicated region body
PF: predicated region fallthrough
CT: control target
= control target key end

     0   :  { %s38_s0 = inlined_call_operand.vmem [shape: f32[1,2048], index: 0, kind: input, shape index: {}, may-alias: {0,1}]   ;;  %s39_s1 = inlined_call_operand.vmem [shape: f32[1,2048], index: 1, kind: output, shape index: {}, may-alias: {0,1}]  }
   0x1   :  { %v8_v0 = vld [vmem:[%s38_s0] sm:$0xff]  ;;  %v9_v1 = vld [vmem:[%s38_s0 + $0x8] sm:$0xff] }
   0x2   :  { %10 = vst [vmem:[%s39_s1] sm:$0xff] %v8_v0  ;;  %11 = vst [vmem:[%s39_s1 + $0x8] sm:$0xff] %v9_v1 }

</bundles_post_ra>
